<compile_context>
chip_gen: v6e
topology: v6e:2x2x1
jax: 0.10.0
libtpu: 0.0.40
codegen_flags: <defaults>
</compile_context>

<pallas_src>
import jax
import jax.numpy as jnp
import numpy as np
from jax.experimental import pallas as pl
from jax.experimental.pallas import tpu as pltpu


def _round_up(x, m):
    return ((x + m - 1) // m) * m


# ----------------------------------------------------------------------------
# Deterministic parameter init (mirrors torch.nn.init.orthogonal_(w, gain) and
# constant_(bias, 0.0)).
# ----------------------------------------------------------------------------
def orthogonal_init(key, shape, gain):
    """Orthogonal init for a 2-D weight of `shape` = (rows, cols), like torch."""
    rows, cols = shape
    flat_shape = (rows, cols) if rows >= cols else (cols, rows)
    a = jax.random.normal(key, flat_shape, dtype=jnp.float32)
    q, r = jnp.linalg.qr(a)
    d = jnp.diagonal(r)
    ph = jnp.where(d == 0, 1.0, jnp.sign(d))  # avoid zeroing a column if d==0
    q = q * ph[None, :]
    if rows < cols:
        q = q.T
    return gain * q[:rows, :cols]


def layer_init_params(key, in_features, out_features, std=np.sqrt(2.0)):
    w = orthogonal_init(key, (out_features, in_features), gain=std)  # torch layout
    b = jnp.zeros((out_features,), dtype=jnp.float32)
    # Return W transposed to (in, out) for x @ W, bias as (1, out).
    return w.T, b.reshape(1, out_features)


# ----------------------------------------------------------------------------
# Packed-slab row layout (all columns = `width` lanes, 8-row aligned blocks):
#   [0,            in_dim_p)            : W1  (in_dim rows used, rest zero)
#   [in_dim_p,     in_dim_p + width_p)  : W2  (width rows used, rest zero)
#   r_w3 = in_dim_p + width_p           : W3.T as one row
#   r_w3 + 8                            : b1
#   r_w3 + 16                           : b2
#   r_w3 + 24, col 0                    : b3 (scalar)
# Total rows = r_w3 + 32  (~10 KB at width=32; a single DMA, device-resident).
# ----------------------------------------------------------------------------
def slab_layout(state_n, action_n, width):
    in_dim = state_n + action_n
    in_dim_p = _round_up(in_dim, 8)
    width_p = _round_up(width, 8)
    r_w2 = in_dim_p
    r_w3 = in_dim_p + width_p
    rows = r_w3 + 32
    return in_dim, in_dim_p, r_w2, r_w3, rows


def pack_c_net_params(params, state_n, action_n, width):
    (w1, b1), (w2, b2), (w3, b3) = params
    in_dim, in_dim_p, r_w2, r_w3, rows = slab_layout(state_n, action_n, width)
    p = jnp.zeros((rows, width), dtype=jnp.float32)
    p = p.at[0:in_dim, :].set(w1)
    p = p.at[r_w2:r_w2 + width, :].set(w2)
    p = p.at[r_w3, :].set(w3[:, 0])
    p = p.at[r_w3 + 8, :].set(b1[0])
    p = p.at[r_w3 + 16, :].set(b2[0])
    p = p.at[r_w3 + 24, 0].set(b3[0, 0])
    return p


# ----------------------------------------------------------------------------
# Pallas kernel factory: 3-layer MLP entirely in VMEM, one batch block / step.
# ----------------------------------------------------------------------------
def make_c_net_kernel(state_n, action_n, width):
    _, in_dim_p, r_w2, r_w3, _ = slab_layout(state_n, action_n, width)
    r_b1 = r_w3 + 8
    r_b2 = r_w3 + 16
    r_b3 = r_w3 + 24

    def kernel(x_ref, p_ref, o_ref):
        # Static, 8-row-aligned slices of the packed parameter slab.
        w1 = p_ref[0:in_dim_p, :]                  # (in_dim_p, width)
        w2 = p_ref[r_w2:r_w2 + width, :]           # (width,    width)
        w3_row = p_ref[r_w3:r_w3 + 1, :]           # (1, width) == W3.T
        b1 = p_ref[r_b1:r_b1 + 1, :]               # (1, width)
        b2 = p_ref[r_b2:r_b2 + 1, :]               # (1, width)
        b3 = p_ref[r_b3:r_b3 + 1, 0:1]             # (1, 1)

        # Layer 1 (MXU): single dot — s|a were concatenated (and zero-padded)
        # once in the wrapper; padded W1 rows are zero.
        h1 = jnp.dot(x_ref[...], w1, preferred_element_type=jnp.float32) + b1
        h1 = jnp.maximum(h1, 0.0)

        # Layer 2 (MXU).
        h2 = jnp.dot(h1, w2, preferred_element_type=jnp.float32) + b2
        h2 = jnp.maximum(h2, 0.0)

        # Layer 3: N=1 projection on VPU (mul) + XLU (lane reduce) — avoids an
        # MXU fill/drain for a 1-lane-wide result.  Kept in f32 (v5e VPU).
        o_ref[...] = jnp.sum(h2 * w3_row, axis=-1, keepdims=True) + b3

    return kernel


def c_net_forward(s, a, packed_params, *, state_n, action_n, width,
                  max_block_b=256):
    """C_net.forward(s, a) -> (B, 1) critic value."""
    B = s.shape[0]
    in_dim, in_dim_p, _, _, rows = slab_layout(state_n, action_n, width)

    # One device-side concat (2 kernel operands instead of 3); zero-pad the
    # feature dim to the 8-row-aligned W1 height.
    parts = [s, a]
    if in_dim_p != in_dim:
        parts.append(jnp.zeros((B, in_dim_p - in_dim), s.dtype))
    x = jnp.concatenate(parts, axis=-1)

    # Batch blocking: multiples of 8 sublanes; a parallel grid lets large
    # batches use both TensorCores on v7x.  At small B this is one grid step.
    bb = min(_round_up(max(B, 1), 8), _round_up(max_block_b, 8))
    B_p = _round_up(max(B, 1), bb)
    if B_p != B:
        x = jnp.concatenate(
            [x, jnp.zeros((B_p - B, in_dim_p), x.dtype)], axis=0)

    kernel = make_c_net_kernel(state_n, action_n, width)

    flops = 2 * B_p * (in_dim_p * width + width * width + width)
    bytes_accessed = 4 * (x.size + packed_params.size + B_p)

    out = pl.pallas_call(
        kernel,
        out_shape=jax.ShapeDtypeStruct((B_p, 1), jnp.float32),
        grid=(B_p // bb,),
        in_specs=[
            pl.BlockSpec((bb, in_dim_p), lambda i: (i, 0)),
            pl.BlockSpec((rows, width), lambda i: (0, 0)),  # resident across steps
        ],
        out_specs=pl.BlockSpec((bb, 1), lambda i: (i, 0)),
        compiler_params=pltpu.CompilerParams(
            dimension_semantics=("parallel",)),
        cost_estimate=pl.CostEstimate(
            flops=flops, transcendentals=0, bytes_accessed=bytes_accessed),
    )(x, packed_params)

    return out[:B]


# ----------------------------------------------------------------------------
# Driver
# ----------------------------------------------------------------------------
if __name__ == "__main__":
    state_n = 12
    action_n = 4
    width = 32
    batch = 8

    key = jax.random.PRNGKey(0)
    k_s, k_a, k1, k2, k3 = jax.random.split(key, 5)

    s = jax.random.normal(k_s, (batch, state_n), dtype=jnp.float32)
    a = jax.random.normal(k_a, (batch, action_n), dtype=jnp.float32)

    params = (
        layer_init_params(k1, state_n + action_n, width),
        layer_init_params(k2, width, width),
        layer_init_params(k3, width, 1),
    )
    # Packed once; stays resident on device and is reused across calls.
    packed = pack_c_net_params(params, state_n, action_n, width)

    out = c_net_forward(s, a, packed,
                        state_n=state_n, action_n=action_n, width=width)
    out = jax.block_until_ready(out)

    # Reference check in plain JAX (same params, same math).
    (w1, b1), (w2, b2), (w3, b3) = params
    x = jnp.concatenate([s, a], axis=-1)
    ref = jnp.maximum(x @ w1 + b1, 0.0)
    ref = jnp.maximum(ref @ w2 + b2, 0.0)
    ref = ref @ w3 + b3
    np.testing.assert_allclose(np.asarray(out), np.asarray(ref),
                               rtol=1e-5, atol=1e-5)

    assert out.shape == (batch, 1)
    print("KERNEL_OK")
</pallas_src>

<mosaic_0001>
module attributes {stable_mosaic.version = 11 : i64} {
  func.func @kernel(%arg0: i32, %arg1: memref<8x16xf32, #tpu.memory_space<vmem>>, %arg2: memref<80x32xf32, #tpu.memory_space<vmem>>, %arg3: memref<8x1xf32, #tpu.memory_space<vmem>>) attributes {dimension_semantics = [#tpu.dimension_semantics<parallel>], iteration_bounds = array<i64: 1>, scalar_prefetch = 0 : i64, scratch_operands = 0 : i64, tpu.core_type = #tpu.core_type<tc>, window_params = [{transform_indices = @transform_0, window_bounds = array<i64: 8, 16>}, {pipeline_mode = #tpu.pipeline_mode<synchronous>, transform_indices = @transform_1, window_bounds = array<i64: 80, 32>}, {transform_indices = @transform_2, window_bounds = array<i64: 8, 1>}]} {
    %c0 = arith.constant 0 : index
    %c0_0 = arith.constant 0 : index
    %0 = vector.load %arg2[%c0, %c0_0] : memref<80x32xf32, #tpu.memory_space<vmem>>, vector<16x32xf32>
    %c16 = arith.constant 16 : index
    %c0_1 = arith.constant 0 : index
    %1 = vector.load %arg2[%c16, %c0_1] : memref<80x32xf32, #tpu.memory_space<vmem>>, vector<32x32xf32>
    %c48 = arith.constant 48 : index
    %c0_2 = arith.constant 0 : index
    %2 = vector.load %arg2[%c48, %c0_2] : memref<80x32xf32, #tpu.memory_space<vmem>>, vector<1x32xf32>
    %c56 = arith.constant 56 : index
    %c0_3 = arith.constant 0 : index
    %3 = vector.load %arg2[%c56, %c0_3] : memref<80x32xf32, #tpu.memory_space<vmem>>, vector<1x32xf32>
    %c64 = arith.constant 64 : index
    %c0_4 = arith.constant 0 : index
    %4 = vector.load %arg2[%c64, %c0_4] : memref<80x32xf32, #tpu.memory_space<vmem>>, vector<1x32xf32>
    %c72 = arith.constant 72 : index
    %c0_5 = arith.constant 0 : index
    %5 = vector.load %arg2[%c72, %c0_5] : memref<80x32xf32, #tpu.memory_space<vmem>>, vector<1x1xf32>
    %c0_6 = arith.constant 0 : index
    %c0_7 = arith.constant 0 : index
    %6 = vector.load %arg1[%c0_6, %c0_7] : memref<8x16xf32, #tpu.memory_space<vmem>>, vector<8x16xf32>
    %cst = arith.constant dense<0.000000e+00> : vector<8x32xf32>
    %7 = tpu.matmul %6, %0, %cst {dimension_numbers = #tpu.dot_dimension_numbers<[1], [0], [0], [1], [0, 0, 1, 1], [], []>} : vector<8x16xf32>, vector<16x32xf32>, vector<8x32xf32> -> vector<8x32xf32>
    %8 = vector.broadcast %3 : vector<1x32xf32> to vector<8x32xf32>
    %9 = arith.addf %7, %8 : vector<8x32xf32>
    %cst_8 = arith.constant 0.000000e+00 : f32
    %10 = vector.broadcast %cst_8 : f32 to vector<8x32xf32>
    %11 = arith.maximumf %9, %10 : vector<8x32xf32>
    %cst_9 = arith.constant dense<0.000000e+00> : vector<8x32xf32>
    %12 = tpu.matmul %11, %1, %cst_9 {dimension_numbers = #tpu.dot_dimension_numbers<[1], [0], [0], [1], [0, 0, 1, 1], [], []>} : vector<8x32xf32>, vector<32x32xf32>, vector<8x32xf32> -> vector<8x32xf32>
    %13 = vector.broadcast %4 : vector<1x32xf32> to vector<8x32xf32>
    %14 = arith.addf %12, %13 : vector<8x32xf32>
    %cst_10 = arith.constant 0.000000e+00 : f32
    %15 = vector.broadcast %cst_10 : f32 to vector<8x32xf32>
    %16 = arith.maximumf %14, %15 : vector<8x32xf32>
    %17 = vector.broadcast %2 : vector<1x32xf32> to vector<8x32xf32>
    %18 = arith.mulf %16, %17 : vector<8x32xf32>
    %cst_11 = arith.constant dense<0.000000e+00> : vector<8xf32>
    %19 = vector.multi_reduction <add>, %18, %cst_11 [1] : vector<8x32xf32> to vector<8xf32>
    %20 = vector.shape_cast %19 : vector<8xf32> to vector<8x1xf32>
    %21 = vector.broadcast %5 : vector<1x1xf32> to vector<8x1xf32>
    %22 = arith.addf %20, %21 : vector<8x1xf32>
    %c0_12 = arith.constant 0 : index
    %c0_13 = arith.constant 0 : index
    %23 = vector.load %arg3[%c0_12, %c0_13] : memref<8x1xf32, #tpu.memory_space<vmem>>, vector<8x1xf32>
    tpu.vector_store %arg3[%c0_12, %c0_13], %22 {strides = array<i32>} : memref<8x1xf32, #tpu.memory_space<vmem>>, vector<8x1xf32>,
    return
  }
  func.func @transform_0(%arg0: i32) -> (i32, i32) {
    %c0_i32 = arith.constant 0 : i32
    %c0_i32_0 = arith.constant 0 : i32
    return %arg0, %c0_i32 : i32, i32
  }
  func.func @transform_1(%arg0: i32) -> (i32, i32) {
    %c0_i32 = arith.constant 0 : i32
    %c0_i32_0 = arith.constant 0 : i32
    %c0_i32_1 = arith.constant 0 : i32
    return %c0_i32, %c0_i32_0 : i32, i32
  }
  func.func @transform_2(%arg0: i32) -> (i32, i32) {
    %c0_i32 = arith.constant 0 : i32
    %c0_i32_0 = arith.constant 0 : i32
    return %arg0, %c0_i32 : i32, i32
  }
}

</mosaic_0001>

<bundles_post_ra>
// kernel: tpu_custom_call.1
= control target key start
LH: loop header
LB: loop body
LE: loop exit
PB: predicated region body
PF: predicated region fallthrough
CT: control target
= control target key end

     0   :  { %v233_v0 = vmov 0.0   ;;  %vm234_vm0 = vmmov 0   ;;  %vm26_vm1 = vcmask 130048   ;;  %vm105_vm2 = vcmask 261120   ;;  %s286_s1 = inlined_call_operand.vmem [shape: f32[80,32], index: 1, kind: input, shape index: {}]   ;;  %s287_s0 = inlined_call_operand.vmem [shape: f32[8,16], index: 0, kind: input, shape index: {}]   ;;  %s288_s2 = inlined_call_operand.vmem [shape: f32[8,1], index: 2, kind: output, shape index: {}]  }
   0x1   :  { %213 = vmatprep.subr.mxu0 %v233_v0  ;;  %v12_v1 = vld [vmem:[%s286_s1 + $0x8] sm:$0xff]  ;;  %v11_v2 = vld [vmem:[%s286_s1] sm:$0xff]  ;;  %217 = vmatprep.mubr.msk.f32.mxu0 %vm234_vm0, %v233_v0  ;;  %v14_v6 = vld [vmem:[%s286_s1 + $0x18] sm:$0xff]  ;;  %vm193_vm3 = vcmask 7168  }
   0x2   :  { %214 = vmatpush3.msra.mxu0 %v12_v1  ;;  %v21_v3 = vld [vmem:[%s287_s0] sm:$0xff]  ;;  %220 = vmatprep.subr.mxu1 %v233_v0  ;;  %v16_v4 = vld [vmem:[%s286_s1 + $0x28] sm:$0xff]  ;;  %v13_v7 = vld [vmem:[%s286_s1 + $0x10] sm:$0xff] }
   0x3   :  { %215 = vmatprep.subr.mxu0 %v233_v0  ;;  %221 = vmatpush3.msra.mxu1 %v16_v4  ;;  %v15_v5 = vld [vmem:[%s286_s1 + $0x20] sm:$0xff]  ;;  %v199_v8 = vld [vmem:[%s286_s1 + $0x38] ss:$0 sm:$0xff]  ;;  %v203_v17 = vld [vmem:[%s286_s1 + $0x30] ss:$0 sm:$0xff] }
   0x4   :  { %216 = vmatpush3.msra.mxu0 %v11_v2  ;;  %222 = vmatprep.subr.mxu1 %v233_v0  ;;  %v201_v13 = vld [vmem:[%s286_s1 + $0x40] ss:$0 sm:$0xff]  ;;  %v204_v21 = vld [vmem:[%s286_s1 + $0x48] ss:$0 sm:$0xff] }
   0x5   :  { %218 = vmatmul.mubr.msk.f32.vlgmr.msra.gmra.mxu0 %vm26_vm1, %v21_v3  ;;  %228 = vmatprep.mubr.msk.f32.mxu1 %vm234_vm0, %v233_v0 }
   0x6   :  { %223 = vmatpush3.msra.mxu1 %v15_v5 }
   0x7   :  { %224 = vmatprep.subr.mxu1 %v233_v0 }
   0x8   :  { %225 = vmatpush3.msra.mxu1 %v14_v6 }
   0x9   :  { %226 = vmatprep.subr.mxu1 %v233_v0 }
   0xa   :  { %227 = vmatpush3.msra.mxu1 %v13_v7 }
  0xc5   :  { %v96_v9 = vpop.f32.mrf.mxu0 }
  0xc6   :  { %v97_v10 = vadd.f32 %v199_v8, %v96_v9 }
  0xc7   :  { %v219_v11 = vpop.f32.mrf.mxu0 }
  0xc8   :  { %v100_v12 = vmax.f32 %v97_v10, 0.0 }
  0xca   :  { %229 = vmatmul.mubr.msk.f32.vlgmr.msra.gmra.mxu1 %vm105_vm2, %v100_v12 }
 0x18a   :  { %v175_v14 = vpop.f32.mrf.mxu1 }
 0x18b   :  { %v176_v15 = vadd.f32 %v201_v13, %v175_v14 }
 0x18c   :  { %v230_v16 = vpop.f32.mrf.mxu1 }
 0x18d   :  { %v179_v18 = vmax.f32 %v176_v15, 0.0 }
 0x18f   :  { %v184_v19 = vmul.f32 %v203_v17, %v179_v18 }
 0x191   :  { %v185_v20 = vsel %vm105_vm2, %v184_v19, 0.0 }
 0x192   :  { %186 = vadd.xlane.f32.xlu0 %v185_v20 }
 0x21b   :  { %v187_v22 = vpop.xlane.xlu0 %186 }
 0x21c   :  { %v192_v23 = vadd.f32 %v204_v21, %v187_v22 }
 0x21e   :  { %194 = vst.msk [vmem:[%s288_s2] sm:$0xff] %vm193_vm3, %v192_v23 }

</bundles_post_ra>
